<compile_context>
chip_gen: v7x
topology: tpu7x:2x2x1
jax: 0.10.0
libtpu: 0.0.40
codegen_flags: <defaults>
</compile_context>

<pallas_src>
import functools

import jax
import jax.numpy as jnp
from jax.experimental import pallas as pl
from jax.experimental.pallas import tpu as pltpu


def _round_up(x, m):
    return (x + m - 1) // m * m


def _conv_bn_relu_kernel(x_ref, w_ref, scale_ref, shift_ref, o_ref):
    # x_ref:     (1, TM, K_pad)  bf16 im2col patch rows for this tile
    # w_ref:     (K_pad, TC)     bf16 folded conv weight
    # scale_ref: (1, TC)         f32  gamma / sqrt(var + eps)
    # shift_ref: (1, TC)         f32  beta - mean * scale
    # o_ref:     (1, TM, TC)     f32  output tile (lane-dense)
    acc = jnp.dot(x_ref[0], w_ref[...], preferred_element_type=jnp.float32)
    y = acc * scale_ref[...] + shift_ref[...]     # fused BN (eval)
    y = jnp.maximum(y, 0.0)                       # ReLU
    o_ref[...] = y.reshape(1, y.shape[0], y.shape[1]).astype(o_ref.dtype)


def conv_bn_relu_pallas(x_nchw, weight_oihw, gamma, beta, running_mean,
                        running_var, *, stride=1, padding=0, dilation=1,
                        eps=1e-5):
    """x_nchw: (N, C_in, H, W) float32 (PyTorch layout). Returns (N, C_out, HO, WO)."""
    N, C_in, H, W = x_nchw.shape
    C_out, _, KH, KW = weight_oihw.shape

    HO = (H + 2 * padding - dilation * (KH - 1) - 1) // stride + 1
    WO = (W + 2 * padding - dilation * (KW - 1) - 1) // stride + 1

    # ---- plain-JAX glue (fuses under jit): layout, padding, im2col, BN fold ----
    x_nhwc = jnp.transpose(x_nchw, (0, 2, 3, 1)).astype(jnp.bfloat16)
    x_pad = jnp.pad(x_nhwc, ((0, 0), (padding, padding), (padding, padding), (0, 0)))

    # im2col: one strided slice per tap (stride handled here, not in-kernel),
    # concatenated along channels in (kh, kw, c_in) order to match the weight.
    taps = []
    for kh in range(KH):
        for kw in range(KW):
            h0 = kh * dilation
            w0 = kw * dilation
            taps.append(x_pad[:,
                              h0:h0 + (HO - 1) * stride + 1:stride,
                              w0:w0 + (WO - 1) * stride + 1:stride, :])
    patches = jnp.concatenate(taps, axis=-1)               # (N, HO, WO, KH*KW*C_in)

    K_dim = KH * KW * C_in
    M = HO * WO
    patches = patches.reshape(N, M, K_dim)

    # Lane-dense padding: contraction dim and C_out to multiples of 128,
    # rows to a multiple of the row tile (>= 8 sublanes).
    K_pad = _round_up(K_dim, 128)
    C_pad = _round_up(C_out, 128)
    TM = min(256, _round_up(M, 8))
    TC = min(256, C_pad)
    M_pad = _round_up(M, TM)

    patches = jnp.pad(patches, ((0, 0), (0, M_pad - M), (0, K_pad - K_dim)))

    # (C_out, C_in, KH, KW) -> (KH, KW, C_in, C_out) -> (KH*KW*C_in, C_out) -> pad
    w = jnp.transpose(weight_oihw, (2, 3, 1, 0)).reshape(K_dim, C_out)
    w = jnp.pad(w.astype(jnp.bfloat16), ((0, K_pad - K_dim), (0, C_pad - C_out)))

    scale = (gamma / jnp.sqrt(running_var + eps)).astype(jnp.float32)
    shift = (beta - running_mean * scale).astype(jnp.float32)
    scale = jnp.pad(scale, (0, C_pad - C_out)).reshape(1, C_pad)
    shift = jnp.pad(shift, (0, C_pad - C_out)).reshape(1, C_pad)

    grid = (N, M_pad // TM, C_pad // TC)

    flops = 2 * N * M * K_dim * C_out
    bytes_accessed = (patches.size * 2 + w.size * 2 + 2 * C_pad * 4
                      + N * M_pad * C_pad * 4)
    # 2x (double buffering) of each input/output block + params + headroom.
    vmem_need = 2 * (TM * K_pad * 2 + K_pad * TC * 2 + 2 * TC * 4 + TM * TC * 4)
    vmem_limit = int(min(max(4 * vmem_need, 4 << 20), 64 << 20))

    out = pl.pallas_call(
        _conv_bn_relu_kernel,
        out_shape=jax.ShapeDtypeStruct((N, M_pad, C_pad), jnp.float32),
        grid_spec=pltpu.PrefetchScalarGridSpec(
            num_scalar_prefetch=0,
            grid=grid,
            in_specs=[
                pl.BlockSpec((1, TM, K_pad), lambda n, m, c: (n, m, 0)),
                pl.BlockSpec((K_pad, TC), lambda n, m, c: (0, c)),
                pl.BlockSpec((1, TC), lambda n, m, c: (0, c)),
                pl.BlockSpec((1, TC), lambda n, m, c: (0, c)),
            ],
            out_specs=pl.BlockSpec((1, TM, TC), lambda n, m, c: (n, m, c)),
        ),
        compiler_params=pltpu.CompilerParams(
            dimension_semantics=("parallel", "parallel", "parallel"),
            vmem_limit_bytes=vmem_limit),
        cost_estimate=pl.CostEstimate(flops=flops, transcendentals=0,
                                      bytes_accessed=bytes_accessed),
    )(patches, w, scale, shift)

    out = out[:, :M, :C_out].reshape(N, HO, WO, C_out)
    return jnp.transpose(out, (0, 3, 1, 2))       # back to NCHW


def conv_bn_relu_ref(x_nchw, weight_oihw, gamma, beta, running_mean,
                     running_var, *, stride=1, padding=0, dilation=1, eps=1e-5):
    """Pure-JAX reference (NCHW conv + eval-mode BN + ReLU)."""
    y = jax.lax.conv_general_dilated(
        x_nchw, weight_oihw,
        window_strides=(stride, stride),
        padding=[(padding, padding), (padding, padding)],
        rhs_dilation=(dilation, dilation),
        dimension_numbers=("NCHW", "OIHW", "NCHW"),
        precision=jax.lax.Precision.HIGHEST)
    scale = gamma / jnp.sqrt(running_var + eps)
    shift = beta - running_mean * scale
    y = y * scale[None, :, None, None] + shift[None, :, None, None]
    return jnp.maximum(y, 0.0)


if __name__ == "__main__":
    # small, deterministic config consistent with the module
    N, C_in, H, W = 2, 4, 16, 16
    C_out, K = 8, 3
    stride, padding, dilation = 1, 1, 1

    key = jax.random.PRNGKey(0)
    k_x, k_w, k_g, k_b, k_m, k_v = jax.random.split(key, 6)

    x = jax.random.normal(k_x, (N, C_in, H, W), dtype=jnp.float32)
    weight = jax.random.normal(k_w, (C_out, C_in, K, K), dtype=jnp.float32) * 0.1
    gamma = jax.random.uniform(k_g, (C_out,), minval=0.5, maxval=1.5,
                               dtype=jnp.float32)
    beta = jax.random.normal(k_b, (C_out,), dtype=jnp.float32) * 0.1
    running_mean = jax.random.normal(k_m, (C_out,), dtype=jnp.float32) * 0.1
    running_var = jax.random.uniform(k_v, (C_out,), minval=0.5, maxval=1.5,
                                     dtype=jnp.float32)

    fn = jax.jit(functools.partial(conv_bn_relu_pallas, stride=stride,
                                   padding=padding, dilation=dilation))
    out = jax.block_until_ready(fn(x, weight, gamma, beta, running_mean,
                                   running_var))

    # Reference on bf16-rounded inputs (the kernel feeds bf16 to the MXU with
    # f32 accumulation), so only accumulation-order differences remain.
    x_bf = x.astype(jnp.bfloat16).astype(jnp.float32)
    w_bf = weight.astype(jnp.bfloat16).astype(jnp.float32)
    ref = conv_bn_relu_ref(x_bf, w_bf, gamma, beta, running_mean, running_var,
                           stride=stride, padding=padding, dilation=dilation)

    assert out.shape == (N, C_out, H, W), out.shape
    err = float(jnp.max(jnp.abs(out - ref)))
    assert jnp.allclose(out, ref, atol=1e-2, rtol=1e-2), err

    print("KERNEL_OK")
</pallas_src>

<mosaic_0001>
module attributes {stable_mosaic.version = 11 : i64} {
  func.func @_conv_bn_relu_kernel(%arg0: i32, %arg1: i32, %arg2: i32, %arg3: memref<1x256x128xbf16, #tpu.memory_space<vmem>>, %arg4: memref<128x128xbf16, #tpu.memory_space<vmem>>, %arg5: memref<1x128xf32, #tpu.memory_space<vmem>>, %arg6: memref<1x128xf32, #tpu.memory_space<vmem>>, %arg7: memref<1x256x128xf32, #tpu.memory_space<vmem>>) attributes {dimension_semantics = [#tpu.dimension_semantics<parallel>, #tpu.dimension_semantics<parallel>, #tpu.dimension_semantics<parallel>], iteration_bounds = array<i64: 2, 1, 1>, scalar_prefetch = 0 : i64, scratch_operands = 0 : i64, tpu.core_type = #tpu.core_type<tc>, window_params = [{transform_indices = @transform_0, window_bounds = array<i64: 1, 256, 128>}, {transform_indices = @transform_1, window_bounds = array<i64: 128, 128>}, {transform_indices = @transform_2, window_bounds = array<i64: 1, 128>}, {transform_indices = @transform_3, window_bounds = array<i64: 1, 128>}, {transform_indices = @transform_4, window_bounds = array<i64: 1, 256, 128>}]} {
    %c0 = arith.constant 0 : index
    %c0_0 = arith.constant 0 : index
    %c0_1 = arith.constant 0 : index
    %0 = vector.load %arg3[%c0, %c0_0, %c0_1] : memref<1x256x128xbf16, #tpu.memory_space<vmem>>, vector<1x256x128xbf16>
    %1 = vector.shape_cast %0 : vector<1x256x128xbf16> to vector<256x128xbf16>
    %c0_2 = arith.constant 0 : index
    %c0_3 = arith.constant 0 : index
    %2 = vector.load %arg4[%c0_2, %c0_3] : memref<128x128xbf16, #tpu.memory_space<vmem>>, vector<128x128xbf16>
    %cst = arith.constant dense<0.000000e+00> : vector<256x128xf32>
    %3 = tpu.matmul %1, %2, %cst {dimension_numbers = #tpu.dot_dimension_numbers<[1], [0], [0], [1], [0, 0, 1, 1], [], []>} : vector<256x128xbf16>, vector<128x128xbf16>, vector<256x128xf32> -> vector<256x128xf32>
    %c0_4 = arith.constant 0 : index
    %c0_5 = arith.constant 0 : index
    %4 = vector.load %arg5[%c0_4, %c0_5] : memref<1x128xf32, #tpu.memory_space<vmem>>, vector<1x128xf32>
    %5 = vector.broadcast %4 : vector<1x128xf32> to vector<256x128xf32>
    %6 = arith.mulf %3, %5 : vector<256x128xf32>
    %c0_6 = arith.constant 0 : index
    %c0_7 = arith.constant 0 : index
    %7 = vector.load %arg6[%c0_6, %c0_7] : memref<1x128xf32, #tpu.memory_space<vmem>>, vector<1x128xf32>
    %8 = vector.broadcast %7 : vector<1x128xf32> to vector<256x128xf32>
    %9 = arith.addf %6, %8 : vector<256x128xf32>
    %cst_8 = arith.constant 0.000000e+00 : f32
    %10 = vector.broadcast %cst_8 : f32 to vector<256x128xf32>
    %11 = arith.maximumf %9, %10 : vector<256x128xf32>
    %12 = vector.shape_cast %11 : vector<256x128xf32> to vector<1x256x128xf32>
    %c0_9 = arith.constant 0 : index
    %c0_10 = arith.constant 0 : index
    %c0_11 = arith.constant 0 : index
    %13 = vector.load %arg7[%c0_9, %c0_10, %c0_11] : memref<1x256x128xf32, #tpu.memory_space<vmem>>, vector<1x256x128xf32>
    tpu.vector_store %arg7[%c0_9, %c0_10, %c0_11], %12 {strides = array<i32>} : memref<1x256x128xf32, #tpu.memory_space<vmem>>, vector<1x256x128xf32>,
    return
  }
  func.func @transform_0(%arg0: i32, %arg1: i32, %arg2: i32) -> (i32, i32, i32) {
    %c0_i32 = arith.constant 0 : i32
    %c0_i32_0 = arith.constant 0 : i32
    return %arg0, %arg1, %c0_i32 : i32, i32, i32
  }
  func.func @transform_1(%arg0: i32, %arg1: i32, %arg2: i32) -> (i32, i32) {
    %c0_i32 = arith.constant 0 : i32
    %c0_i32_0 = arith.constant 0 : i32
    return %c0_i32, %arg2 : i32, i32
  }
  func.func @transform_2(%arg0: i32, %arg1: i32, %arg2: i32) -> (i32, i32) {
    %c0_i32 = arith.constant 0 : i32
    %c0_i32_0 = arith.constant 0 : i32
    return %c0_i32, %arg2 : i32, i32
  }
  func.func @transform_3(%arg0: i32, %arg1: i32, %arg2: i32) -> (i32, i32) {
    %c0_i32 = arith.constant 0 : i32
    %c0_i32_0 = arith.constant 0 : i32
    return %c0_i32, %arg2 : i32, i32
  }
  func.func @transform_4(%arg0: i32, %arg1: i32, %arg2: i32) -> (i32, i32, i32) {
    %c0_i32 = arith.constant 0 : i32
    return %arg0, %arg1, %arg2 : i32, i32, i32
  }
}

</mosaic_0001>

<bundles_post_ra>
// kernel: conv_bn_relu_pallas.1
= control target key start
LH: loop header
LB: loop body
LE: loop exit
PB: predicated region body
PF: predicated region fallthrough
CT: control target
= control target key end

     0   :  { %s1159_s15 = smov 0   ;;  %s1161_s16 = smov 0   ;;  %s1346_s0 = inlined_call_operand.vmem [shape: bf16[2,256,128], index: 0, kind: input, shape index: {}]   ;;  %s1347_s1 = inlined_call_operand.vmem [shape: bf16[128,128], index: 1, kind: input, shape index: {}]   ;;  %s1348_s2 = inlined_call_operand.vmem [shape: f32[1,128], index: 2, kind: input, shape index: {}]   ;;  %s1349_s3 = inlined_call_operand.vmem [shape: f32[1,128], index: 3, kind: input, shape index: {}]   ;;  %s1350_s4 = inlined_call_operand.vmem [shape: f32[2,256,128], index: 4, kind: output, shape index: {}]  }
   0x1   :  { %s1163_s17 = smov 0  }
   0x2 LB: > { %s33_s18 = sadd.s32 1, %s1128_s16  ;;  %p939_p0 = scmp.ge.s32.totalorder %s1132_s17, 1  ;;  %s1132_s17 = sphi %s1163_s17, %s14_s17   ;;  %s1128_s16 = sphi %s1161_s16, %s1352_s16   ;;  %s1124_s15 = sphi %s1159_s15, %s1351_s15  }
   0x3   : > { %p35_p1 = scmp.ge.s32.totalorder %s33_s18, 2  ;;  %p217_p2 = scmp.lt.s32.totalorder %s1132_s17, 3 }
   0x5   : > { %s1354_s18 = smov (%p35_p1, %s33_s18), 0  ;;  %p218_p3 = pnand %p939_p0, %p217_p2 }
   0x6   : > { %v1086_v0 = vld [vmem:[%s1347_s1] sm:$0xff] (!%p218_p3)   ;;  %p265_p4 = scmp.lt.s32.totalorder (!%p218_p3), %s1124_s15, 1  ;;  %v1087_v1 = vld [vmem:[%s1347_s1 + $0x8] sm:$0xff] (!%p218_p3)   ;;  %v1088_v2 = vld [vmem:[%s1347_s1 + $0x10] sm:$0xff] (!%p218_p3)  }
   0x7   : > { %221 = sbr.rel (%p218_p3) target bundleno = 285 (0x11d), region = 36  ;;  %998 = vmatprep.subr.bf16.mxu0 (!%p218_p3), %v1086_v0  ;;  %1046 = vmatprep.subr.bf16.mxu1 (!%p218_p3), %v1086_v0  ;;  %v1089_v3 = vld [vmem:[%s1347_s1 + $0x18] sm:$0xff] (!%p218_p3)   ;;  %v1090_v6 = vld [vmem:[%s1347_s1 + $0x20] sm:$0xff] (!%p218_p3)   ;;  %v1091_v7 = vld [vmem:[%s1347_s1 + $0x28] sm:$0xff] (!%p218_p3)  }
   0x8   : > { %999 = vmatpush3.bf16.msra.mxu0 (!%p218_p3), %v1086_v0  ;;  %1054 = vmatpush3.bf16.msra.mxu1 (!%p218_p3), %v1086_v0  ;;  %v1092_v8 = vld [vmem:[%s1347_s1 + $0x30] sm:$0xff] (!%p218_p3)   ;;  %v1093_v9 = vld [vmem:[%s1347_s1 + $0x38] sm:$0xff] (!%p218_p3)   ;;  %v1228_v24 = vld [vmem:[%s1348_s2] ss:$0 sm:$0xff] (!%p218_p3) }
   0x9   : > { %1000 = vmatprep.subr.bf16.mxu0 (!%p218_p3), %v1087_v1  ;;  %1047 = vmatprep.subr.bf16.mxu1 (!%p218_p3), %v1087_v1  ;;  %v1233_v26 = vld [vmem:[%s1349_s3] ss:$0 sm:$0xff] (!%p218_p3) }
   0xc   : > { %1001 = vmatpush3.bf16.msra.mxu0 (!%p218_p3), %v1087_v1  ;;  %1055 = vmatpush3.bf16.msra.mxu1 (!%p218_p3), %v1087_v1 }
   0xd   : > { %1002 = vmatprep.subr.bf16.mxu0 (!%p218_p3), %v1088_v2  ;;  %1048 = vmatprep.subr.bf16.mxu1 (!%p218_p3), %v1088_v2 }
   0xe   : > { %s1356_s15 = smov (!%p265_p4, %s1124_s15), 1 }
   0xf   : > { %s972_s25 = sshll.u32 %s1356_s15, 7  ;;  %s973_s21 = sshll.u32 %s1356_s15, 8 }
  0x10   : > { %s1192_s28 = scalar_lea.vmem %s1346_s0, %s972_s25  ;;  %1003 = vmatpush3.bf16.msra.mxu0 %v1088_v2  ;;  %1056 = vmatpush3.bf16.msra.mxu1 %v1088_v2  ;;  %s1247_s23 = scalar_lea.vmem %s1350_s4, %s973_s21 }
  0x11   : > { %v1094_v4 = vld [vmem:[%s1192_s28] sm:$0xff]   ;;  %1004 = vmatprep.subr.bf16.mxu0 %v1089_v3  ;;  %1049 = vmatprep.subr.bf16.mxu1 %v1089_v3  ;;  %v1096_v10 = vld [vmem:[%s1192_s28 + $0x8] sm:$0xff]   ;;  %v1098_v12 = vld [vmem:[%s1192_s28 + $0x10] sm:$0xff]  }
  0x12   : > { %v1095_v5 = vld [vmem:[%s1192_s28 + $0x40] sm:$0xff]   ;;  %1014 = vmatprep.mubr.bf16.mxu0 %v1094_v4  ;;  %v1097_v11 = vld [vmem:[%s1192_s28 + $0x48] sm:$0xff]   ;;  %v1099_v13 = vld [vmem:[%s1192_s28 + $0x50] sm:$0xff]  }
  0x13   : > { %1030 = vmatprep.mubr.bf16.mxu1 %v1095_v5  ;;  %v1100_v14 = vld [vmem:[%s1192_s28 + $0x18] sm:$0xff]   ;;  %v1102_v16 = vld [vmem:[%s1192_s28 + $0x20] sm:$0xff]   ;;  %v1104_v18 = vld [vmem:[%s1192_s28 + $0x28] sm:$0xff]  }
  0x14   : > { %1005 = vmatpush3.bf16.msra.mxu0 %v1089_v3  ;;  %1057 = vmatpush3.bf16.msra.mxu1 %v1089_v3  ;;  %v1101_v15 = vld [vmem:[%s1192_s28 + $0x58] sm:$0xff]   ;;  %v1103_v17 = vld [vmem:[%s1192_s28 + $0x60] sm:$0xff]   ;;  %v1105_v19 = vld [vmem:[%s1192_s28 + $0x68] sm:$0xff]  }
  0x15   : > { %1006 = vmatprep.subr.bf16.mxu0 %v1090_v6  ;;  %1050 = vmatprep.subr.bf16.mxu1 %v1090_v6  ;;  %v1106_v20 = vld [vmem:[%s1192_s28 + $0x30] sm:$0xff]   ;;  %v1108_v22 = vld [vmem:[%s1192_s28 + $0x38] sm:$0xff]  }
  0x16   : > { %v1107_v21 = vld [vmem:[%s1192_s28 + $0x70] sm:$0xff]   ;;  %v1109_v23 = vld [vmem:[%s1192_s28 + $0x78] sm:$0xff]  }
  0x18   : > { %1007 = vmatpush3.bf16.msra.mxu0 %v1090_v6  ;;  %1058 = vmatpush3.bf16.msra.mxu1 %v1090_v6 }
  0x19   : > { %1008 = vmatprep.subr.bf16.mxu0 %v1091_v7  ;;  %1051 = vmatprep.subr.bf16.mxu1 %v1091_v7 }
  0x1c   : > { %1009 = vmatpush3.bf16.msra.mxu0 %v1091_v7  ;;  %1059 = vmatpush3.bf16.msra.mxu1 %v1091_v7 }
  0x1d   : > { %1010 = vmatprep.subr.bf16.mxu0 %v1092_v8  ;;  %1052 = vmatprep.subr.bf16.mxu1 %v1092_v8 }
  0x20   : > { %1011 = vmatpush3.bf16.msra.mxu0 %v1092_v8  ;;  %1060 = vmatpush3.bf16.msra.mxu1 %v1092_v8 }
  0x21   : > { %1012 = vmatprep.subr.bf16.mxu0 %v1093_v9  ;;  %1053 = vmatprep.subr.bf16.mxu1 %v1093_v9 }
  0x24   : > { %1013 = vmatpush3.bf16.msra.mxu0 %v1093_v9  ;;  %1061 = vmatpush3.bf16.msra.mxu1 %v1093_v9 }
  0x27   : > { %1015 = vmatmul.mubr.bf16.vlgmr.msra.gmra.mrb[0].mxu0 %v1096_v10  ;;  %1031 = vmatmul.mubr.bf16.vlgmr.msra.gmra.mrb[0].mxu1 %v1097_v11 }
  0x28   : > { %1018 = vmatprep.mubr.bf16.mxu0 %v1098_v12  ;;  %1034 = vmatprep.mubr.bf16.mxu1 %v1099_v13 }
  0x2f   : > { %1019 = vmatmul.mubr.bf16.gmra.mrb[4].mxu0 %v1100_v14  ;;  %1035 = vmatmul.mubr.bf16.gmra.mrb[4].mxu1 %v1101_v15 }
  0x30   : > { %1022 = vmatprep.mubr.bf16.mxu0 %v1102_v16  ;;  %1038 = vmatprep.mubr.bf16.mxu1 %v1103_v17 }
  0x37   : > { %1023 = vmatmul.mubr.bf16.gmra.mrb[8].mxu0 %v1104_v18  ;;  %1039 = vmatmul.mubr.bf16.gmra.mrb[8].mxu1 %v1105_v19 }
  0x38   : > { %1026 = vmatprep.mubr.bf16.mxu0 %v1106_v20  ;;  %1042 = vmatprep.mubr.bf16.mxu1 %v1107_v21 }
  0x3f   : > { %1027 = vmatmul.mubr.bf16.gmra.mrb[12].mxu0 %v1108_v22  ;;  %1043 = vmatmul.mubr.bf16.gmra.mrb[12].mxu1 %v1109_v23 }
  0xfa   : > { %v1016_v25 = vpop.f32.mrb[0].mxu0  ;;  %v1032_v27 = vpop.f32.mrb[0].mxu1 }
  0xfb   : > { %v660_v28 = vmul.f32 %v1016_v25, %v1228_v24  ;;  %v676_v29 = vmul.f32 %v1032_v27, %v1228_v24  ;;  %v524_v30 = vpop.f32.mrb[1].mxu0  ;;  %v588_v31 = vpop.f32.mrb[1].mxu1 }
  0xfc   : > { %v658_v32 = vmul.f32 %v1228_v24, %v524_v30  ;;  %v674_v33 = vmul.f32 %v1228_v24, %v588_v31  ;;  %v1017_v34 = vpop.f32.mrb[2].mxu0  ;;  %v1033_v35 = vpop.f32.mrb[2].mxu1 }
  0xfd   : > { %v699_v36 = vadd.f32 %v1233_v26, %v660_v28  ;;  %v715_v37 = vadd.f32 %v1233_v26, %v676_v29  ;;  %v661_v38 = vmul.f32 %v1017_v34, %v1228_v24  ;;  %v677_v39 = vmul.f32 %v1033_v35, %v1228_v24  ;;  %v527_v40 = vpop.f32.mrb[3].mxu0  ;;  %v591_v41 = vpop.f32.mrb[3].mxu1 }
  0xfe   : > { %v697_v42 = vadd.f32 %v1233_v26, %v658_v32  ;;  %v713_v43 = vadd.f32 %v1233_v26, %v674_v33  ;;  %v659_v44 = vmul.f32 %v1228_v24, %v527_v40  ;;  %v675_v45 = vmul.f32 %v1228_v24, %v591_v41 }
  0xff   : > { %v731_v46 = vmax.f32 %v699_v36, 0.0  ;;  %v747_v47 = vmax.f32 %v715_v37, 0.0  ;;  %v700_v48 = vadd.f32 %v1233_v26, %v661_v38  ;;  %v716_v49 = vadd.f32 %v1233_v26, %v677_v39 }
 0x100   : > { %v729_v50 = vmax.f32 %v697_v42, 0.0  ;;  %v745_v51 = vmax.f32 %v713_v43, 0.0  ;;  %v698_v52 = vadd.f32 %v1233_v26, %v659_v44  ;;  %v714_v53 = vadd.f32 %v1233_v26, %v675_v45 }
 0x101   : > { %763 = vst [vmem:[%s1247_s23 + $0x10] sm:$0xff] %v731_v46  ;;  %779 = vst [vmem:[%s1247_s23 + $0x90] sm:$0xff] %v747_v47  ;;  %v732_v54 = vmax.f32 %v700_v48, 0.0  ;;  %v748_v55 = vmax.f32 %v716_v49, 0.0 }
 0x102   : > { %761 = vst [vmem:[%s1247_s23] sm:$0xff] %v729_v50  ;;  %777 = vst [vmem:[%s1247_s23 + $0x80] sm:$0xff] %v745_v51  ;;  %v730_v56 = vmax.f32 %v698_v52, 0.0  ;;  %v746_v57 = vmax.f32 %v714_v53, 0.0  ;;  %v1020_v58 = vpop.f32.mrb[4].mxu0  ;;  %v1036_v59 = vpop.f32.mrb[4].mxu1 }
 0x103   : > { %764 = vst [vmem:[%s1247_s23 + $0x18] sm:$0xff] %v732_v54  ;;  %780 = vst [vmem:[%s1247_s23 + $0x98] sm:$0xff] %v748_v55  ;;  %v664_v60 = vmul.f32 %v1020_v58, %v1228_v24  ;;  %v680_v61 = vmul.f32 %v1036_v59, %v1228_v24  ;;  %v540_v62 = vpop.f32.mrb[5].mxu0  ;;  %v604_v63 = vpop.f32.mrb[5].mxu1 }
 0x104   : > { %762 = vst [vmem:[%s1247_s23 + $0x8] sm:$0xff] %v730_v56  ;;  %778 = vst [vmem:[%s1247_s23 + $0x88] sm:$0xff] %v746_v57  ;;  %v662_v0 = vmul.f32 %v1228_v24, %v540_v62  ;;  %v678_v1 = vmul.f32 %v1228_v24, %v604_v63  ;;  %v1021_v2 = vpop.f32.mrb[6].mxu0  ;;  %v1037_v3 = vpop.f32.mrb[6].mxu1 }
 0x105   : > { %v703_v4 = vadd.f32 %v1233_v26, %v664_v60  ;;  %v719_v5 = vadd.f32 %v1233_v26, %v680_v61  ;;  %v665_v6 = vmul.f32 %v1021_v2, %v1228_v24  ;;  %v681_v7 = vmul.f32 %v1037_v3, %v1228_v24  ;;  %v543_v8 = vpop.f32.mrb[7].mxu0  ;;  %v607_v9 = vpop.f32.mrb[7].mxu1 }
 0x106   : > { %v701_v10 = vadd.f32 %v1233_v26, %v662_v0  ;;  %v717_v11 = vadd.f32 %v1233_v26, %v678_v1  ;;  %v663_v12 = vmul.f32 %v1228_v24, %v543_v8  ;;  %v679_v13 = vmul.f32 %v1228_v24, %v607_v9 }
 0x107   : > { %v735_v14 = vmax.f32 %v703_v4, 0.0  ;;  %v751_v15 = vmax.f32 %v719_v5, 0.0  ;;  %v704_v16 = vadd.f32 %v1233_v26, %v665_v6  ;;  %v720_v17 = vadd.f32 %v1233_v26, %v681_v7 }
 0x108   : > { %v733_v18 = vmax.f32 %v701_v10, 0.0  ;;  %v749_v19 = vmax.f32 %v717_v11, 0.0  ;;  %v702_v20 = vadd.f32 %v1233_v26, %v663_v12  ;;  %v718_v21 = vadd.f32 %v1233_v26, %v679_v13 }
 0x109   : > { %767 = vst [vmem:[%s1247_s23 + $0x30] sm:$0xff] %v735_v14  ;;  %783 = vst [vmem:[%s1247_s23 + $0xb0] sm:$0xff] %v751_v15  ;;  %v736_v22 = vmax.f32 %v704_v16, 0.0  ;;  %v752_v23 = vmax.f32 %v720_v17, 0.0 }
 0x10a   : > { %765 = vst [vmem:[%s1247_s23 + $0x20] sm:$0xff] %v733_v18  ;;  %781 = vst [vmem:[%s1247_s23 + $0xa0] sm:$0xff] %v749_v19  ;;  %v734_v25 = vmax.f32 %v702_v20, 0.0  ;;  %v750_v27 = vmax.f32 %v718_v21, 0.0  ;;  %v1024_v28 = vpop.f32.mrb[8].mxu0  ;;  %v1040_v29 = vpop.f32.mrb[8].mxu1 }
 0x10b   : > { %768 = vst [vmem:[%s1247_s23 + $0x38] sm:$0xff] %v736_v22  ;;  %784 = vst [vmem:[%s1247_s23 + $0xb8] sm:$0xff] %v752_v23  ;;  %v668_v30 = vmul.f32 %v1024_v28, %v1228_v24  ;;  %v684_v31 = vmul.f32 %v1040_v29, %v1228_v24  ;;  %v556_v32 = vpop.f32.mrb[9].mxu0  ;;  %v620_v33 = vpop.f32.mrb[9].mxu1 }
 0x10c   : > { %766 = vst [vmem:[%s1247_s23 + $0x28] sm:$0xff] %v734_v25  ;;  %782 = vst [vmem:[%s1247_s23 + $0xa8] sm:$0xff] %v750_v27  ;;  %v666_v34 = vmul.f32 %v1228_v24, %v556_v32  ;;  %v682_v35 = vmul.f32 %v1228_v24, %v620_v33  ;;  %v1025_v36 = vpop.f32.mrb[10].mxu0  ;;  %v1041_v37 = vpop.f32.mrb[10].mxu1 }
 0x10d   : > { %v707_v38 = vadd.f32 %v1233_v26, %v668_v30  ;;  %v723_v39 = vadd.f32 %v1233_v26, %v684_v31  ;;  %v669_v40 = vmul.f32 %v1025_v36, %v1228_v24  ;;  %v685_v41 = vmul.f32 %v1041_v37, %v1228_v24  ;;  %v559_v42 = vpop.f32.mrb[11].mxu0  ;;  %v623_v43 = vpop.f32.mrb[11].mxu1 }
 0x10e   : > { %v705_v44 = vadd.f32 %v1233_v26, %v666_v34  ;;  %v721_v45 = vadd.f32 %v1233_v26, %v682_v35  ;;  %v667_v46 = vmul.f32 %v1228_v24, %v559_v42  ;;  %v683_v47 = vmul.f32 %v1228_v24, %v623_v43 }
 0x10f   : > { %v739_v48 = vmax.f32 %v707_v38, 0.0  ;;  %v755_v49 = vmax.f32 %v723_v39, 0.0  ;;  %v708_v50 = vadd.f32 %v1233_v26, %v669_v40  ;;  %v724_v51 = vadd.f32 %v1233_v26, %v685_v41 }
 0x110   : > { %v737_v52 = vmax.f32 %v705_v44, 0.0  ;;  %v753_v53 = vmax.f32 %v721_v45, 0.0  ;;  %v706_v54 = vadd.f32 %v1233_v26, %v667_v46  ;;  %v722_v55 = vadd.f32 %v1233_v26, %v683_v47 }
 0x111   : > { %771 = vst [vmem:[%s1247_s23 + $0x50] sm:$0xff] %v739_v48  ;;  %787 = vst [vmem:[%s1247_s23 + $0xd0] sm:$0xff] %v755_v49  ;;  %v740_v56 = vmax.f32 %v708_v50, 0.0  ;;  %v756_v57 = vmax.f32 %v724_v51, 0.0 }
 0x112   : > { %769 = vst [vmem:[%s1247_s23 + $0x40] sm:$0xff] %v737_v52  ;;  %785 = vst [vmem:[%s1247_s23 + $0xc0] sm:$0xff] %v753_v53  ;;  %v738_v58 = vmax.f32 %v706_v54, 0.0  ;;  %v754_v59 = vmax.f32 %v722_v55, 0.0  ;;  %v1028_v60 = vpop.f32.mrb[12].mxu0  ;;  %v1044_v61 = vpop.f32.mrb[12].mxu1 }
 0x113   : > { %772 = vst [vmem:[%s1247_s23 + $0x58] sm:$0xff] %v740_v56  ;;  %788 = vst [vmem:[%s1247_s23 + $0xd8] sm:$0xff] %v756_v57  ;;  %v672_v62 = vmul.f32 %v1028_v60, %v1228_v24  ;;  %v688_v63 = vmul.f32 %v1044_v61, %v1228_v24  ;;  %v572_v0 = vpop.f32.mrb[13].mxu0  ;;  %v636_v1 = vpop.f32.mrb[13].mxu1 }
 0x114   : > { %770 = vst [vmem:[%s1247_s23 + $0x48] sm:$0xff] %v738_v58  ;;  %786 = vst [vmem:[%s1247_s23 + $0xc8] sm:$0xff] %v754_v59  ;;  %v670_v2 = vmul.f32 %v1228_v24, %v572_v0  ;;  %v686_v3 = vmul.f32 %v1228_v24, %v636_v1  ;;  %v1029_v4 = vpop.f32.mrb[14].mxu0  ;;  %v1045_v5 = vpop.f32.mrb[14].mxu1 }
 0x115   : > { %v711_v6 = vadd.f32 %v1233_v26, %v672_v62  ;;  %v727_v7 = vadd.f32 %v1233_v26, %v688_v63  ;;  %v673_v8 = vmul.f32 %v1029_v4, %v1228_v24  ;;  %v689_v9 = vmul.f32 %v1045_v5, %v1228_v24  ;;  %v575_v10 = vpop.f32.mrb[15].mxu0  ;;  %v639_v11 = vpop.f32.mrb[15].mxu1 }
 0x116   : > { %v709_v12 = vadd.f32 %v1233_v26, %v670_v2  ;;  %v725_v13 = vadd.f32 %v1233_v26, %v686_v3  ;;  %v671_v14 = vmul.f32 %v1228_v24, %v575_v10  ;;  %v687_v15 = vmul.f32 %v1228_v24, %v639_v11 }
 0x117   : > { %v743_v16 = vmax.f32 %v711_v6, 0.0  ;;  %v759_v17 = vmax.f32 %v727_v7, 0.0  ;;  %v712_v18 = vadd.f32 %v1233_v26, %v673_v8  ;;  %v728_v19 = vadd.f32 %v1233_v26, %v689_v9 }
 0x118   : > { %v741_v20 = vmax.f32 %v709_v12, 0.0  ;;  %v757_v21 = vmax.f32 %v725_v13, 0.0  ;;  %v710_v22 = vadd.f32 %v1233_v26, %v671_v14  ;;  %v726_v23 = vadd.f32 %v1233_v26, %v687_v15 }
 0x119   : > { %775 = vst [vmem:[%s1247_s23 + $0x70] sm:$0xff] %v743_v16  ;;  %791 = vst [vmem:[%s1247_s23 + $0xf0] sm:$0xff] %v759_v17  ;;  %v744_v25 = vmax.f32 %v712_v18, 0.0  ;;  %v760_v24 = vmax.f32 %v728_v19, 0.0 }
 0x11a   : > { %773 = vst [vmem:[%s1247_s23 + $0x60] sm:$0xff] %v741_v20  ;;  %789 = vst [vmem:[%s1247_s23 + $0xe0] sm:$0xff] %v757_v21  ;;  %v742_v27 = vmax.f32 %v710_v22, 0.0  ;;  %v758_v28 = vmax.f32 %v726_v23, 0.0 }
 0x11b   : > { %776 = vst [vmem:[%s1247_s23 + $0x78] sm:$0xff] %v744_v25  ;;  %792 = vst [vmem:[%s1247_s23 + $0xf8] sm:$0xff] %v760_v24 }
 0x11c   : > { %774 = vst [vmem:[%s1247_s23 + $0x68] sm:$0xff] %v742_v27  ;;  %790 = vst [vmem:[%s1247_s23 + $0xe8] sm:$0xff] %v758_v28 }
 0x11d PF: > { %s14_s17 = sadd.s32 1, %s1132_s17   ;;  %s1351_s15 = smov %s1128_s16 }
 0x11e   : > { %p11_p5 = scmp.ge.s32.totalorder %s14_s17, 4   ;;  %s1352_s16 = smov %s1354_s18 }
 0x120   :  { %13 = sbr.rel (!%p11_p5) target bundleno = 2 (0x2), region = 75 }

</bundles_post_ra>
